<compile_context>
chip_gen: v7x
topology: tpu7x:2x2x1
jax: 0.10.0
libtpu: 0.0.40
codegen_flags: <defaults>
</compile_context>

<pallas_src>
import jax
import jax.numpy as jnp
from jax.experimental import pallas as pl
from jax.experimental.pallas import tpu as pltpu


def _round_up(n, m):
    return ((n + m - 1) // m) * m


def _padded_bytes(shape, itemsize):
    r, c = shape
    return _round_up(r, 8) * _round_up(c, 128) * itemsize


# ---------------------------------------------------------------------------
# Kernel A: small H (H < 128).  Fused W1, block-diag W2, fused W3 -> [s_pre|t].
# ---------------------------------------------------------------------------
def _coupling_kernel_fused(x_ref, os_ref, w1_ref, b1_ref, w2_ref, b2_ref,
                           w3_ref, b3_ref, y_ref, ld_ref):
    x = x_ref[...]                                    # (TB, D) f32
    cdt = w1_ref.dtype                                # matmul dtype (bf16 or f32)
    D = x.shape[-1]

    h = jnp.dot(x.astype(cdt), w1_ref[...],
                preferred_element_type=jnp.float32) + b1_ref[...]
    h = jnp.maximum(h, 0.0)
    h = jnp.dot(h.astype(cdt), w2_ref[...],
                preferred_element_type=jnp.float32) + b2_ref[...]
    h = jnp.maximum(h, 0.0)
    o3 = jnp.dot(h.astype(cdt), w3_ref[...],
                 preferred_element_type=jnp.float32) + b3_ref[...]   # (TB, 2D)
    s_pre = o3[:, :D]
    t = o3[:, D:]                                     # (1-mask) already folded in

    s = jnp.tanh(jnp.maximum(s_pre, 0.0)) * os_ref[...]   # os = (1-mask)*scale
    y_ref[...] = (x + t) * jnp.exp(s)
    ld_ref[...] = jnp.sum(s, axis=-1, keepdims=True)       # logdet in-kernel


# ---------------------------------------------------------------------------
# Kernel B: H % 128 == 0.  Fused layer-1 only; lane-aligned slice of h, per-head
# layer-2/3 weights (no zero-padding).
# ---------------------------------------------------------------------------
def _coupling_kernel_split(x_ref, os_ref, w1_ref, b1_ref, ws2_ref, bs2_ref,
                           wt2_ref, bt2_ref, ws3_ref, bs3_ref, wt3_ref, bt3_ref,
                           y_ref, ld_ref):
    x = x_ref[...]
    cdt = w1_ref.dtype
    H = ws2_ref.shape[0]

    h = jnp.dot(x.astype(cdt), w1_ref[...],
                preferred_element_type=jnp.float32) + b1_ref[...]
    h = jnp.maximum(h, 0.0)                            # (TB, 2H)
    hs = h[:, :H]                                      # lane-aligned slices
    ht = h[:, H:]

    hs = jnp.maximum(jnp.dot(hs.astype(cdt), ws2_ref[...],
                             preferred_element_type=jnp.float32) + bs2_ref[...], 0.0)
    ht = jnp.maximum(jnp.dot(ht.astype(cdt), wt2_ref[...],
                             preferred_element_type=jnp.float32) + bt2_ref[...], 0.0)

    s_pre = jnp.dot(hs.astype(cdt), ws3_ref[...],
                    preferred_element_type=jnp.float32) + bs3_ref[...]
    t = jnp.dot(ht.astype(cdt), wt3_ref[...],
                preferred_element_type=jnp.float32) + bt3_ref[...]   # omm folded

    s = jnp.tanh(jnp.maximum(s_pre, 0.0)) * os_ref[...]
    y_ref[...] = (x + t) * jnp.exp(s)
    ld_ref[...] = jnp.sum(s, axis=-1, keepdims=True)


def affine_coupling_forward(x, params, *, tb=1024, matmul_dtype=jnp.bfloat16):
    """x: (B, D) float32. Returns (y: (B, D), logdet: (B,))."""
    B, D = x.shape
    H = params["ws1"].shape[1]
    f32 = jnp.float32
    wdt = matmul_dtype

    mask = params["mask"].reshape(1, D).astype(f32)
    mask2 = (mask * mask).reshape(D, 1)           # (x*mask)*mask == x*(mask*mask)
    omm = 1.0 - mask                              # (1, D)
    omm_scale = (omm * params["scale"].reshape(1, D)).astype(f32)

    # --- one-time constant folding / weight fusion (plain XLA, outside kernel) ---
    W1 = (mask2 * jnp.concatenate([params["ws1"], params["wt1"]], axis=1)).astype(wdt)
    b1 = jnp.concatenate([params["bs1"], params["bt1"]]).reshape(1, 2 * H).astype(f32)

    if H % 128 == 0:
        ws2 = params["ws2"].astype(wdt)
        bs2 = params["bs2"].reshape(1, H).astype(f32)
        wt2 = params["wt2"].astype(wdt)
        bt2 = params["bt2"].reshape(1, H).astype(f32)
        ws3 = params["ws3"].astype(wdt)
        bs3 = params["bs3"].reshape(1, D).astype(f32)
        wt3 = (params["wt3"] * omm).astype(wdt)                 # fold (1-mask)
        bt3 = (params["bt3"].reshape(1, D) * omm).astype(f32)   # fold (1-mask)
        weight_args = (W1, b1, ws2, bs2, wt2, bt2, ws3, bs3, wt3, bt3)
        kernel = _coupling_kernel_split
    else:
        zHH = jnp.zeros((H, H), f32)
        W2 = jnp.concatenate(
            [jnp.concatenate([params["ws2"], zHH], axis=1),
             jnp.concatenate([zHH, params["wt2"]], axis=1)], axis=0).astype(wdt)
        b2 = jnp.concatenate([params["bs2"], params["bt2"]]).reshape(1, 2 * H).astype(f32)
        zHD = jnp.zeros((H, D), f32)
        W3 = jnp.concatenate(
            [jnp.concatenate([params["ws3"], zHD], axis=1),
             jnp.concatenate([zHD, params["wt3"] * omm], axis=1)], axis=0).astype(wdt)
        b3 = jnp.concatenate(
            [params["bs3"].reshape(1, D), params["bt3"].reshape(1, D) * omm],
            axis=1).astype(f32)
        weight_args = (W1, b1, W2, b2, W3, b3)
        kernel = _coupling_kernel_fused

    # --- batch tiling: big tiles, but keep >= 2 tiles when B allows (v7x megacore) ---
    tb = max(8, min(tb, _round_up((B + 1) // 2, 8)))

    resident = 2 * sum(_padded_bytes(w.shape, w.dtype.itemsize)
                       for w in (omm_scale,) + weight_args)

    def _vmem_est(tb_):
        stream = 2 * (2 * _padded_bytes((tb_, D), 4) + _padded_bytes((tb_, 1), 4))
        interm = 4 * _padded_bytes((tb_, 2 * H), 4)
        return resident + stream + interm

    while tb > 8 and _vmem_est(tb) > (24 << 20):      # sized for v7x's smaller VMEM
        tb = max(8, _round_up(tb // 2, 8))

    B_pad = _round_up(B, tb)
    if B_pad != B:
        x = jnp.pad(x, ((0, B_pad - B), (0, 0)))
    grid = (B_pad // tb,)

    def _invariant(arr):
        return pl.BlockSpec(arr.shape, lambda i: (0, 0))

    in_specs = ([pl.BlockSpec((tb, D), lambda i: (i, 0)), _invariant(omm_scale)]
                + [_invariant(w) for w in weight_args])
    out_specs = (
        pl.BlockSpec((tb, D), lambda i: (i, 0)),   # y
        pl.BlockSpec((tb, 1), lambda i: (i, 0)),   # per-row logdet
    )

    cp_kwargs = dict(dimension_semantics=("parallel",))
    est = _vmem_est(tb)
    if est > (12 << 20):
        cp_kwargs["vmem_limit_bytes"] = int(min(48 << 20, 2 * est))

    y_pad, ld_pad = pl.pallas_call(
        kernel,
        out_shape=(
            jax.ShapeDtypeStruct((B_pad, D), f32),
            jax.ShapeDtypeStruct((B_pad, 1), f32),
        ),
        grid=grid,
        in_specs=in_specs,
        out_specs=out_specs,
        compiler_params=pltpu.CompilerParams(**cp_kwargs),
    )(x, omm_scale, *weight_args)

    return y_pad[:B], ld_pad[:B, 0]


# ---------------------------------------------------------------------------
# Parameter construction + pure-JAX reference (exact translation of the module)
# ---------------------------------------------------------------------------
def make_params(key, input_dim, hidden_dim):
    keys = jax.random.split(key, 13)

    def w(k, shape, std=0.1):
        return jax.random.normal(k, shape, dtype=jnp.float32) * std

    return {
        "mask": jnp.asarray([(i % 2) for i in range(input_dim)], dtype=jnp.float32),
        "scale": jax.random.normal(keys[0], (input_dim,), dtype=jnp.float32),
        "ws1": w(keys[1], (input_dim, hidden_dim)),
        "bs1": w(keys[2], (hidden_dim,)),
        "ws2": w(keys[3], (hidden_dim, hidden_dim)),
        "bs2": w(keys[4], (hidden_dim,)),
        "ws3": w(keys[5], (hidden_dim, input_dim)),
        "bs3": w(keys[6], (input_dim,)),
        "wt1": w(keys[7], (input_dim, hidden_dim)),
        "bt1": w(keys[8], (hidden_dim,)),
        "wt2": w(keys[9], (hidden_dim, hidden_dim)),
        "bt2": w(keys[10], (hidden_dim,)),
        "wt3": w(keys[11], (hidden_dim, input_dim)),
        "bt3": w(keys[12], (input_dim,)),
    }


def reference_forward(x, p):
    mask = p["mask"][None, :]
    xm = (x * mask) * mask
    hs = jax.nn.relu(xm @ p["ws1"] + p["bs1"])
    hs = jax.nn.relu(hs @ p["ws2"] + p["bs2"])
    s = jnp.tanh(jax.nn.relu(hs @ p["ws3"] + p["bs3"])) * p["scale"][None, :]
    ht = jax.nn.relu(xm @ p["wt1"] + p["bt1"])
    ht = jax.nn.relu(ht @ p["wt2"] + p["bt2"])
    t = ht @ p["wt3"] + p["bt3"]
    s = (1.0 - mask) * s
    t = (1.0 - mask) * t
    y = (x + t) * jnp.exp(s)
    return y, jnp.sum(s, axis=-1)


if __name__ == "__main__":
    key = jax.random.PRNGKey(0)
    k_param, k_x, k_param2 = jax.random.split(key, 3)

    B, D = 200, 8   # B not a multiple of the tile -> exercises padding + 2-tile grid

    # --- small-H fused path (H < 128), default bf16 matmuls ---
    H = 32
    params = make_params(k_param, D, H)
    x = jax.random.normal(k_x, (B, D), dtype=jnp.float32)

    y, logdet = affine_coupling_forward(x, params)            # bf16 MXU path
    jax.block_until_ready((y, logdet))
    y_ref, ld_ref = reference_forward(x, params)
    assert y.shape == (B, D) and logdet.shape == (B,)
    # bf16 matmuls (f32 accumulation) -> looser tolerance vs the f32 reference
    assert jnp.allclose(y, y_ref, atol=5e-2, rtol=5e-2), "y mismatch (bf16)"
    assert jnp.allclose(logdet, ld_ref, atol=5e-2, rtol=5e-2), "logdet mismatch (bf16)"

    # same path with f32 matmuls: tight check of the folded/fused-weight math
    y32, ld32 = affine_coupling_forward(x, params, matmul_dtype=jnp.float32)
    jax.block_until_ready((y32, ld32))
    assert jnp.allclose(y32, y_ref, atol=1e-4, rtol=1e-4), "y mismatch (f32)"
    assert jnp.allclose(ld32, ld_ref, atol=1e-4, rtol=1e-4), "logdet mismatch (f32)"

    # --- lane-aligned path (H % 128 == 0): per-head weights, no zero-padding ---
    H2 = 128
    params2 = make_params(k_param2, D, H2)
    y2, ld2 = affine_coupling_forward(x, params2, matmul_dtype=jnp.float32)
    jax.block_until_ready((y2, ld2))
    y2_ref, ld2_ref = reference_forward(x, params2)
    assert jnp.allclose(y2, y2_ref, atol=1e-4, rtol=1e-4), "y mismatch (split path)"
    assert jnp.allclose(ld2, ld2_ref, atol=1e-4, rtol=1e-4), "logdet mismatch (split path)"

    print("KERNEL_OK")
</pallas_src>

<mosaic_0001>
module attributes {stable_mosaic.version = 11 : i64} {
  func.func @_coupling_kernel_fused(%arg0: i32, %arg1: memref<104x8xf32, #tpu.memory_space<vmem>>, %arg2: memref<1x8xf32, #tpu.memory_space<vmem>>, %arg3: memref<8x64xbf16, #tpu.memory_space<vmem>>, %arg4: memref<1x64xf32, #tpu.memory_space<vmem>>, %arg5: memref<64x64xbf16, #tpu.memory_space<vmem>>, %arg6: memref<1x64xf32, #tpu.memory_space<vmem>>, %arg7: memref<64x16xbf16, #tpu.memory_space<vmem>>, %arg8: memref<1x16xf32, #tpu.memory_space<vmem>>, %arg9: memref<104x8xf32, #tpu.memory_space<vmem>>, %arg10: memref<104x1xf32, #tpu.memory_space<vmem>>) attributes {dimension_semantics = [#tpu.dimension_semantics<parallel>], iteration_bounds = array<i64: 2>, scalar_prefetch = 0 : i64, scratch_operands = 0 : i64, tpu.core_type = #tpu.core_type<tc>, window_params = [{transform_indices = @transform_0, window_bounds = array<i64: 104, 8>}, {pipeline_mode = #tpu.pipeline_mode<synchronous>, transform_indices = @transform_1, window_bounds = array<i64: 1, 8>}, {pipeline_mode = #tpu.pipeline_mode<synchronous>, transform_indices = @transform_2, window_bounds = array<i64: 8, 64>}, {pipeline_mode = #tpu.pipeline_mode<synchronous>, transform_indices = @transform_3, window_bounds = array<i64: 1, 64>}, {pipeline_mode = #tpu.pipeline_mode<synchronous>, transform_indices = @transform_4, window_bounds = array<i64: 64, 64>}, {pipeline_mode = #tpu.pipeline_mode<synchronous>, transform_indices = @transform_5, window_bounds = array<i64: 1, 64>}, {pipeline_mode = #tpu.pipeline_mode<synchronous>, transform_indices = @transform_6, window_bounds = array<i64: 64, 16>}, {pipeline_mode = #tpu.pipeline_mode<synchronous>, transform_indices = @transform_7, window_bounds = array<i64: 1, 16>}, {transform_indices = @transform_8, window_bounds = array<i64: 104, 8>}, {transform_indices = @transform_9, window_bounds = array<i64: 104, 1>}]} {
    %c0 = arith.constant 0 : index
    %c0_0 = arith.constant 0 : index
    %0 = vector.load %arg1[%c0, %c0_0] : memref<104x8xf32, #tpu.memory_space<vmem>>, vector<104x8xf32>
    %1 = arith.truncf %0 : vector<104x8xf32> to vector<104x8xbf16>
    %c0_1 = arith.constant 0 : index
    %c0_2 = arith.constant 0 : index
    %2 = vector.load %arg3[%c0_1, %c0_2] : memref<8x64xbf16, #tpu.memory_space<vmem>>, vector<8x64xbf16>
    %cst = arith.constant dense<0.000000e+00> : vector<104x64xf32>
    %3 = tpu.matmul %1, %2, %cst {dimension_numbers = #tpu.dot_dimension_numbers<[1], [0], [0], [1], [0, 0, 1, 1], [], []>} : vector<104x8xbf16>, vector<8x64xbf16>, vector<104x64xf32> -> vector<104x64xf32>
    %c0_3 = arith.constant 0 : index
    %c0_4 = arith.constant 0 : index
    %4 = vector.load %arg4[%c0_3, %c0_4] : memref<1x64xf32, #tpu.memory_space<vmem>>, vector<1x64xf32>
    %5 = vector.broadcast %4 : vector<1x64xf32> to vector<104x64xf32>
    %6 = arith.addf %3, %5 : vector<104x64xf32>
    %cst_5 = arith.constant 0.000000e+00 : f32
    %7 = vector.broadcast %cst_5 : f32 to vector<104x64xf32>
    %8 = arith.maximumf %6, %7 : vector<104x64xf32>
    %9 = arith.truncf %8 : vector<104x64xf32> to vector<104x64xbf16>
    %c0_6 = arith.constant 0 : index
    %c0_7 = arith.constant 0 : index
    %10 = vector.load %arg5[%c0_6, %c0_7] : memref<64x64xbf16, #tpu.memory_space<vmem>>, vector<64x64xbf16>
    %cst_8 = arith.constant dense<0.000000e+00> : vector<104x64xf32>
    %11 = tpu.matmul %9, %10, %cst_8 {dimension_numbers = #tpu.dot_dimension_numbers<[1], [0], [0], [1], [0, 0, 1, 1], [], []>} : vector<104x64xbf16>, vector<64x64xbf16>, vector<104x64xf32> -> vector<104x64xf32>
    %c0_9 = arith.constant 0 : index
    %c0_10 = arith.constant 0 : index
    %12 = vector.load %arg6[%c0_9, %c0_10] : memref<1x64xf32, #tpu.memory_space<vmem>>, vector<1x64xf32>
    %13 = vector.broadcast %12 : vector<1x64xf32> to vector<104x64xf32>
    %14 = arith.addf %11, %13 : vector<104x64xf32>
    %cst_11 = arith.constant 0.000000e+00 : f32
    %15 = vector.broadcast %cst_11 : f32 to vector<104x64xf32>
    %16 = arith.maximumf %14, %15 : vector<104x64xf32>
    %17 = arith.truncf %16 : vector<104x64xf32> to vector<104x64xbf16>
    %c0_12 = arith.constant 0 : index
    %c0_13 = arith.constant 0 : index
    %18 = vector.load %arg7[%c0_12, %c0_13] : memref<64x16xbf16, #tpu.memory_space<vmem>>, vector<64x16xbf16>
    %cst_14 = arith.constant dense<0.000000e+00> : vector<104x16xf32>
    %19 = tpu.matmul %17, %18, %cst_14 {dimension_numbers = #tpu.dot_dimension_numbers<[1], [0], [0], [1], [0, 0, 1, 1], [], []>} : vector<104x64xbf16>, vector<64x16xbf16>, vector<104x16xf32> -> vector<104x16xf32>
    %c0_15 = arith.constant 0 : index
    %c0_16 = arith.constant 0 : index
    %20 = vector.load %arg8[%c0_15, %c0_16] : memref<1x16xf32, #tpu.memory_space<vmem>>, vector<1x16xf32>
    %21 = vector.broadcast %20 : vector<1x16xf32> to vector<104x16xf32>
    %22 = arith.addf %19, %21 : vector<104x16xf32>
    %23 = vector.extract_strided_slice %22 {offsets = [0, 0], sizes = [104, 8], strides = [1, 1]} : vector<104x16xf32> to vector<104x8xf32>
    %24 = vector.extract_strided_slice %22 {offsets = [0, 8], sizes = [104, 8], strides = [1, 1]} : vector<104x16xf32> to vector<104x8xf32>
    %cst_17 = arith.constant 0.000000e+00 : f32
    %25 = vector.broadcast %cst_17 : f32 to vector<104x8xf32>
    %26 = arith.maximumf %23, %25 : vector<104x8xf32>
    %27 = math.tanh %26 : vector<104x8xf32>
    %c0_18 = arith.constant 0 : index
    %c0_19 = arith.constant 0 : index
    %28 = vector.load %arg2[%c0_18, %c0_19] : memref<1x8xf32, #tpu.memory_space<vmem>>, vector<1x8xf32>
    %29 = vector.broadcast %28 : vector<1x8xf32> to vector<104x8xf32>
    %30 = arith.mulf %27, %29 : vector<104x8xf32>
    %31 = arith.addf %0, %24 : vector<104x8xf32>
    %32 = math.exp %30 : vector<104x8xf32>
    %33 = arith.mulf %31, %32 : vector<104x8xf32>
    %c0_20 = arith.constant 0 : index
    %c0_21 = arith.constant 0 : index
    %34 = vector.load %arg9[%c0_20, %c0_21] : memref<104x8xf32, #tpu.memory_space<vmem>>, vector<104x8xf32>
    tpu.vector_store %arg9[%c0_20, %c0_21], %33 {strides = array<i32>} : memref<104x8xf32, #tpu.memory_space<vmem>>, vector<104x8xf32>,
    %cst_22 = arith.constant dense<0.000000e+00> : vector<104xf32>
    %35 = vector.multi_reduction <add>, %30, %cst_22 [1] : vector<104x8xf32> to vector<104xf32>
    %36 = vector.shape_cast %35 : vector<104xf32> to vector<104x1xf32>
    %c0_23 = arith.constant 0 : index
    %c0_24 = arith.constant 0 : index
    %37 = vector.load %arg10[%c0_23, %c0_24] : memref<104x1xf32, #tpu.memory_space<vmem>>, vector<104x1xf32>
    tpu.vector_store %arg10[%c0_23, %c0_24], %36 {strides = array<i32>} : memref<104x1xf32, #tpu.memory_space<vmem>>, vector<104x1xf32>,
    return
  }
  func.func @transform_0(%arg0: i32) -> (i32, i32) {
    %c0_i32 = arith.constant 0 : i32
    %c0_i32_0 = arith.constant 0 : i32
    return %arg0, %c0_i32 : i32, i32
  }
  func.func @transform_1(%arg0: i32) -> (i32, i32) {
    %c0_i32 = arith.constant 0 : i32
    %c0_i32_0 = arith.constant 0 : i32
    %c0_i32_1 = arith.constant 0 : i32
    return %c0_i32, %c0_i32_0 : i32, i32
  }
  func.func @transform_2(%arg0: i32) -> (i32, i32) {
    %c0_i32 = arith.constant 0 : i32
    %c0_i32_0 = arith.constant 0 : i32
    %c0_i32_1 = arith.constant 0 : i32
    return %c0_i32, %c0_i32_0 : i32, i32
  }
  func.func @transform_3(%arg0: i32) -> (i32, i32) {
    %c0_i32 = arith.constant 0 : i32
    %c0_i32_0 = arith.constant 0 : i32
    %c0_i32_1 = arith.constant 0 : i32
    return %c0_i32, %c0_i32_0 : i32, i32
  }
  func.func @transform_4(%arg0: i32) -> (i32, i32) {
    %c0_i32 = arith.constant 0 : i32
    %c0_i32_0 = arith.constant 0 : i32
    %c0_i32_1 = arith.constant 0 : i32
    return %c0_i32, %c0_i32_0 : i32, i32
  }
  func.func @transform_5(%arg0: i32) -> (i32, i32) {
    %c0_i32 = arith.constant 0 : i32
    %c0_i32_0 = arith.constant 0 : i32
    %c0_i32_1 = arith.constant 0 : i32
    return %c0_i32, %c0_i32_0 : i32, i32
  }
  func.func @transform_6(%arg0: i32) -> (i32, i32) {
    %c0_i32 = arith.constant 0 : i32
    %c0_i32_0 = arith.constant 0 : i32
    %c0_i32_1 = arith.constant 0 : i32
    return %c0_i32, %c0_i32_0 : i32, i32
  }
  func.func @transform_7(%arg0: i32) -> (i32, i32) {
    %c0_i32 = arith.constant 0 : i32
    %c0_i32_0 = arith.constant 0 : i32
    %c0_i32_1 = arith.constant 0 : i32
    return %c0_i32, %c0_i32_0 : i32, i32
  }
  func.func @transform_8(%arg0: i32) -> (i32, i32) {
    %c0_i32 = arith.constant 0 : i32
    %c0_i32_0 = arith.constant 0 : i32
    return %arg0, %c0_i32 : i32, i32
  }
  func.func @transform_9(%arg0: i32) -> (i32, i32) {
    %c0_i32 = arith.constant 0 : i32
    %c0_i32_0 = arith.constant 0 : i32
    return %arg0, %c0_i32 : i32, i32
  }
}

</mosaic_0001>

<bundles_post_ra>
// kernel: tpu_custom_call.1
= control target key start
LH: loop header
LB: loop body
LE: loop exit
PB: predicated region body
PF: predicated region fallthrough
CT: control target
= control target key end

     0   :  { %s1445_s30 = smov 0   ;;  %s1852_s0 = inlined_call_operand.vmem [shape: f32[208,8], index: 0, kind: input, shape index: {}]   ;;  %s1853_s1 = inlined_call_operand.vmem [shape: f32[1,8], index: 1, kind: input, shape index: {}]   ;;  %s1854_s2 = inlined_call_operand.vmem [shape: bf16[8,64], index: 2, kind: input, shape index: {}]   ;;  %s1855_s3 = inlined_call_operand.vmem [shape: f32[1,64], index: 3, kind: input, shape index: {}]   ;;  %s1856_s4 = inlined_call_operand.vmem [shape: bf16[64,64], index: 4, kind: input, shape index: {}]   ;;  %s1857_s5 = inlined_call_operand.vmem [shape: f32[1,64], index: 5, kind: input, shape index: {}]   ;;  %s1858_s6 = inlined_call_operand.vmem [shape: bf16[64,16], index: 6, kind: input, shape index: {}]   ;;  %s1859_s7 = inlined_call_operand.vmem [shape: f32[1,16], index: 7, kind: input, shape index: {}]   ;;  %s1860_s8 = inlined_call_operand.vmem [shape: f32[208,8], index: 8, kind: output, shape index: {0}]   ;;  %s1861_s9 = inlined_call_operand.vmem [shape: f32[208,1], index: 9, kind: output, shape index: {1}]  }
   0x1 LB: > { %s1136_s10 = sadd.s32 4294967295, %s1390_s30   ;;  %p1140_p0 = scmp.ge.s32.totalorder %s1390_s30, 1  ;;  %s1390_s30 = sphi %s1445_s30, %s20_s30  }
   0x2   : > { %p291_p1 = scmp.lt.s32.totalorder %s1390_s30, 3 }
   0x4   : > { %p292_p2 = pnand %p1140_p0, %p291_p1 }
   0x5   : > { %v371_v0 = vld [vmem:[%s1854_s2] sm:$0xf] (!%p292_p2)  ;;  %vm401_vm0 = vcmask (!%p292_p2), 1043456   ;;  %s332_s13 = smul.u32 (!%p292_p2), 13, %s1136_s10  ;;  %v1392_v1 = vmov (!%p292_p2), 0.0   ;;  %vm1393_vm1 = vmmov (!%p292_p2), 0  }
   0x6   : > { %295 = sbr.rel (%p292_p2) target bundleno = 1043 (0x413), region = 52  ;;  %1209 = vmatprep.subr.bf16.mxu0 (!%p292_p2), %v1392_v1  ;;  %v403_v2 = vsel (!%p292_p2), %vm401_vm0, %v371_v0, 0  ;;  %1211 = vmatprep.mubr.msk.bf16.mxu0 (!%p292_p2), %vm1393_vm1, %v1392_v1  ;;  %vm379_vm2 = vcmask (!%p292_p2), 64512   ;;  %v1324_v8 = vld [vmem:[%s1856_s4] sm:$0xff] (!%p292_p2)   ;;  %v1325_v15 = vld [vmem:[%s1856_s4 + $0x8] sm:$0xff] (!%p292_p2)   ;;  %v1326_v17 = vld [vmem:[%s1856_s4 + $0x10] sm:$0xff] (!%p292_p2)  }
   0x7   : > { %1210 = vmatpush3.bf16.msra.mxu0 (!%p292_p2), %v403_v2  ;;  %p333_p3 = scmp.lt.s32.totalorder (!%p292_p2), %s332_s13, 25  ;;  %1311 = vmatprep.subr.bf16.mxu1 (!%p292_p2), %v1392_v1  ;;  %v1327_v26 = vld [vmem:[%s1856_s4 + $0x18] sm:$0xff] (!%p292_p2)   ;;  %v1328_v27 = vld [vmem:[%s1858_s6] sm:$0xff] (!%p292_p2)   ;;  %v1329_v28 = vld [vmem:[%s1858_s6 + $0x8] sm:$0xff] (!%p292_p2)   ;;  %vm552_vm3 = vcmask (!%p292_p2), 523264   ;;  %s1394_s21 = smov (!%p292_p2), 120  }
   0x8   : > { %1312 = vmatpush3.bf16.msra.mxu1 (!%p292_p2), %v403_v2  ;;  %1227 = vmatprep.mubr.msk.bf16.mxu1 (!%p292_p2), %vm1393_vm1, %v1392_v1  ;;  %v1330_v29 = vld [vmem:[%s1858_s6 + $0x10] sm:$0xff] (!%p292_p2)   ;;  %v1576_v30 = vld [vmem:[%s1855_s3] ss:$0 sm:$0xff] (!%p292_p2)  ;;  %vm1032_vm4 = vcmask (!%p292_p2), 7168  }
   0x9   : > { %1239 = vmatprep.subr.bf16.mxu1 (!%p292_p2), %v1392_v1  ;;  %1275 = vmatprep.subr.bf16.mxu0 (!%p292_p2), %v1392_v1 }
   0xd   : > { %s1863_s13 = smov (!%p333_p3, %s332_s13), 25 }
   0xe   : > { %s1464_s14 = sshll.u32 %s1863_s13, 3 }
   0xf   : > { %s1470_s17 = scalar_lea.vmem %s1852_s0, %s1464_s14  ;;  %s1739_s26 = scalar_lea.vmem %s1860_s8, %s1464_s14 }
  0x10   : > { %v1473_v3 = vld [vmem:[%s1470_s17] sm:$0xff]  ;;  %v1476_v4 = vld [vmem:[%s1470_s17 + $0x8] sm:$0xff]  ;;  %v1493_v9 = vld [vmem:[%s1470_s17 + $0x10] sm:$0xff]  ;;  %s1778_s29 = scalar_lea.vmem %s1861_s9, %s1464_s14 }
  0x11   : > { %v364_v5 = vpack.c.bf16 %v1476_v4, %v1473_v3  ;;  %v1481_v6 = vld [vmem:[%s1470_s17 + $0x40] sm:$0xff]  ;;  %v1485_v7 = vld [vmem:[%s1470_s17 + $0x48] sm:$0xff]  ;;  %v1496_v10 = vld [vmem:[%s1470_s17 + $0x18] sm:$0xff] }
  0x12   : > { %v368_v11 = vpack.c.bf16 %v1485_v7, %v1481_v6  ;;  %v365_v12 = vpack.c.bf16 %v1496_v10, %v1493_v9  ;;  %v1506_v13 = vld [vmem:[%s1470_s17 + $0x50] sm:$0xff]  ;;  %v1509_v14 = vld [vmem:[%s1470_s17 + $0x58] sm:$0xff]  ;;  %v1524_v18 = vld [vmem:[%s1470_s17 + $0x20] sm:$0xff] }
  0x13   : > { %1212 = vmatmul.mubr.msk.bf16.vlgmr.msra.gmra.mrb[0].mxu0 %vm379_vm2, %v364_v5  ;;  %v369_v16 = vpack.c.bf16 %v1509_v14, %v1506_v13  ;;  %v1527_v19 = vld [vmem:[%s1470_s17 + $0x28] sm:$0xff]  ;;  %v1536_v21 = vld [vmem:[%s1470_s17 + $0x60] sm:$0xff]  ;;  %v1545_v23 = vld [vmem:[%s1470_s17 + $0x30] sm:$0xff] }
  0x14   : > { %1215 = vmatprep.mubr.msk.bf16.mxu0 %vm1393_vm1, %v1392_v1  ;;  %1228 = vmatmul.mubr.msk.bf16.vlgmr.msra.gmra.mrb[0].mxu1 %vm379_vm2, %v368_v11  ;;  %v366_v20 = vpack.c.bf16 %v1527_v19, %v1524_v18  ;;  %v370_v22 = vpack.c.bf16 %v1536_v21, %v1536_v21  ;;  %v1548_v24 = vld [vmem:[%s1470_s17 + $0x38] sm:$0xff] }
  0x15   : > { %1231 = vmatprep.mubr.msk.bf16.mxu1 %vm1393_vm1, %v1392_v1  ;;  %1240 = vmatpush3.bf16.msra.mxu1 %v1324_v8  ;;  %v367_v25 = vpack.c.bf16 %v1548_v24, %v1545_v23 }
  0x16   : > { %1241 = vmatprep.subr.bf16.mxu1 %v1392_v1  ;;  %1276 = vmatpush3.bf16.msra.mxu0 %v1328_v27 }
  0x17   : > { %1277 = vmatprep.subr.bf16.mxu0 %v1392_v1 }
  0x19   : > { %1242 = vmatpush3.bf16.msra.mxu1 %v1325_v15 }
  0x1a   : > { %1243 = vmatprep.subr.bf16.mxu1 %v1392_v1  ;;  %1278 = vmatpush3.bf16.msra.mxu0 %v1329_v28 }
  0x1b   : > { %1216 = vmatmul.mubr.msk.bf16.gmra.mrb[4].mxu0 %vm379_vm2, %v365_v12  ;;  %1279 = vmatprep.subr.bf16.mxu0 %v1392_v1 }
  0x1c   : > { %1219 = vmatprep.mubr.msk.bf16.mxu0 %vm1393_vm1, %v1392_v1  ;;  %1232 = vmatmul.mubr.msk.bf16.gmra.mrb[4].mxu1 %vm379_vm2, %v369_v16 }
  0x1d   : > { %1235 = vmatprep.mubr.msk.bf16.mxu1 %vm1393_vm1, %v1392_v1  ;;  %1244 = vmatpush3.bf16.msra.mxu1 %v1326_v17 }
  0x1e   : > { %1245 = vmatprep.subr.bf16.mxu1 %v1392_v1  ;;  %1280 = vmatpush3.bf16.msra.mxu0 %v1330_v29 }
  0x1f   : > { %1281 = vmatprep.subr.bf16.mxu0 %v1392_v1 }
  0x21   : > { %1246 = vmatpush3.bf16.msra.mxu1 %v1327_v26 }
  0x23   : > { %1220 = vmatmul.mubr.msk.bf16.gmra.mrb[8].mxu0 %vm379_vm2, %v366_v20 }
  0x24   : > { %1223 = vmatprep.mubr.msk.bf16.mxu0 %vm1393_vm1, %v1392_v1  ;;  %1236 = vmatmul.mubr.msk.bf16.gmra.mrb[8].mxu1 %vm379_vm2, %v370_v22 }
  0x25   : > { %1247 = vmatprep.mubr.msk.bf16.mxu1 %vm1393_vm1, %v1392_v1 }
  0x2b   : > { %1224 = vmatmul.mubr.msk.bf16.gmra.mrb[12].mxu0 %vm379_vm2, %v367_v25 }
  0x2c   : > { %1283 = vmatprep.mubr.msk.bf16.mxu0 %vm1393_vm1, %v1392_v1 }
  0xe6   : > { %v439_v31 = vpop.f32.mrb[0].mxu0 }
  0xe7   : > { %v440_v32 = vadd.f32 %v1576_v30, %v439_v31  ;;  %v1213_v33 = vpop.f32.mrb[1].mxu0  ;;  %v471_v37 = vpop.f32.mrb[0].mxu1 }
  0xe8   : > { %v442_v34 = vpop.f32.mrb[2].mxu0  ;;  %v472_v38 = vadd.f32 %v1576_v30, %v471_v37  ;;  %v1229_v39 = vpop.f32.mrb[1].mxu1 }
  0xe9   : > { %v443_v35 = vadd.f32 %v1576_v30, %v442_v34  ;;  %v1214_v36 = vpop.f32.mrb[3].mxu0  ;;  %v493_v40 = vmax.f32 %v440_v32, 0.0  ;;  %v474_v42 = vpop.f32.mrb[2].mxu1 }
  0xea   : > { %v501_v43 = vmax.f32 %v472_v38, 0.0  ;;  %v475_v44 = vadd.f32 %v1576_v30, %v474_v42  ;;  %v1230_v45 = vpop.f32.mrb[3].mxu1 }
  0xeb   : > { %v494_v41 = vmax.f32 %v443_v35, 0.0 }
  0xec   : > { %v502_v48 = vmax.f32 %v475_v44, 0.0  ;;  %v1616_v44 = vld [vmem:[%s1857_s5] ss:$0 sm:$0xff] }
  0xed   : > { %v506_v46 = vpack.c.bf16 %v494_v41, %v493_v40 }
  0xee   : > { %v447_v47 = vpop.f32.mrb[4].mxu0  ;;  %v510_v52 = vpack.c.bf16 %v502_v48, %v501_v43  ;;  %v1331_v43 = vld [vmem:[%s1858_s6 + $0x18] sm:$0xff]  }
  0xef   : > { %v448_v49 = vadd.f32 %v1576_v30, %v447_v47  ;;  %v1217_v50 = vpop.f32.mrb[5].mxu0  ;;  %1248 = vmatmul.mubr.msk.bf16.vlgmr.msra.gmra.mrb[12].mxu1 %vm552_vm3, %v506_v46  ;;  %v479_v55 = vpop.f32.mrb[4].mxu1  ;;  %1282 = vmatpush3.bf16.msra.mxu0 %v1331_v43 }
  0xf0   : > { %v450_v51 = vpop.f32.mrb[6].mxu0  ;;  %1251 = vmatprep.mubr.msk.bf16.mxu1 %vm1393_vm1, %v1392_v1  ;;  %v480_v56 = vadd.f32 %v1576_v30, %v479_v55  ;;  %v1233_v57 = vpop.f32.mrb[5].mxu1 }
  0xf1   : > { %v451_v53 = vadd.f32 %v1576_v30, %v450_v51  ;;  %v1218_v54 = vpop.f32.mrb[7].mxu0  ;;  %v495_v58 = vmax.f32 %v448_v49, 0.0  ;;  %v482_v60 = vpop.f32.mrb[6].mxu1 }
  0xf2   : > { %v503_v61 = vmax.f32 %v480_v56, 0.0  ;;  %v483_v62 = vadd.f32 %v1576_v30, %v482_v60  ;;  %v1234_v63 = vpop.f32.mrb[7].mxu1 }
  0xf3   : > { %v496_v59 = vmax.f32 %v451_v53, 0.0 }
  0xf4   : > { %v504_v5 = vmax.f32 %v483_v62, 0.0 }
  0xf5   : > { %v507_v0 = vpack.c.bf16 %v496_v59, %v495_v58 }
  0xf6   : > { %v455_v2 = vpop.f32.mrb[8].mxu0  ;;  %v511_v15 = vpack.c.bf16 %v504_v5, %v503_v61 }
  0xf7   : > { %v456_v8 = vadd.f32 %v1576_v30, %v455_v2  ;;  %v1221_v11 = vpop.f32.mrb[9].mxu0  ;;  %1252 = vmatmul.mubr.msk.bf16.gmra.mrb[16].mxu1 %vm552_vm3, %v507_v0  ;;  %v487_v20 = vpop.f32.mrb[8].mxu1 }
  0xf8   : > { %v458_v12 = vpop.f32.mrb[10].mxu0  ;;  %1255 = vmatprep.mubr.msk.bf16.mxu1 %vm1393_vm1, %v1392_v1  ;;  %v1237_v22 = vpop.f32.mrb[9].mxu1  ;;  %v488_v40 = vadd.f32 %v1576_v30, %v487_v20 }
  0xf9   : > { %v459_v16 = vadd.f32 %v1576_v30, %v458_v12  ;;  %v1222_v17 = vpop.f32.mrb[11].mxu0  ;;  %v497_v25 = vmax.f32 %v456_v8, 0.0  ;;  %v490_v27 = vpop.f32.mrb[10].mxu1 }
  0xfa   : > { %v1238_v28 = vpop.f32.mrb[11].mxu1  ;;  %v505_v41 = vmax.f32 %v488_v40, 0.0 }
  0xfb   : > { %v498_v26 = vmax.f32 %v459_v16, 0.0 }
  0xfc   : > { %v512_v42 = vpack.c.bf16 %v505_v41, %v505_v41 }
  0xfd   : > { %v508_v29 = vpack.c.bf16 %v498_v26, %v497_v25 }
  0xfe   : > { %v463_v31 = vpop.f32.mrb[12].mxu0 }
  0xff   : > { %1256 = vmatmul.mubr.msk.bf16.gmra.mrb[20].mxu1 %vm552_vm3, %v508_v29  ;;  %v464_v32 = vadd.f32 %v1576_v30, %v463_v31  ;;  %v1225_v33 = vpop.f32.mrb[13].mxu0 }
 0x100   : > { %v466_v34 = vpop.f32.mrb[14].mxu0  ;;  %1259 = vmatprep.mubr.msk.bf16.mxu1 %vm1393_vm1, %v1392_v1 }
 0x101   : > { %v499_v35 = vmax.f32 %v464_v32, 0.0  ;;  %v467_v36 = vadd.f32 %v1576_v30, %v466_v34  ;;  %v1226_v37 = vpop.f32.mrb[15].mxu0 }
 0x103   : > { %v500_v38 = vmax.f32 %v467_v36, 0.0 }
 0x105   : > { %v509_v39 = vpack.c.bf16 %v500_v38, %v499_v35 }
 0x107   : > { %1260 = vmatmul.mubr.msk.bf16.gmra.mrb[24].mxu1 %vm552_vm3, %v509_v39 }
 0x108   : > { %1263 = vmatprep.mubr.msk.bf16.mxu1 %vm1393_vm1, %v1392_v1 }
 0x10f   : > { %1264 = vmatmul.mubr.msk.bf16.gmra.mrb[28].mxu1 %vm552_vm3, %v510_v52 }
 0x110   : > { %1267 = vmatprep.mubr.msk.bf16.mxu1 %vm1393_vm1, %v1392_v1 }
 0x117   : > { %1268 = vmatmul.mubr.msk.bf16.gmra.mrb[32].mxu1 %vm552_vm3, %v511_v15 }
 0x118   : > { %1271 = vmatprep.mubr.msk.bf16.mxu1 %vm1393_vm1, %v1392_v1 }
 0x11f   : > { %1272 = vmatmul.mubr.msk.bf16.gmra.mrb[36].mxu1 %vm552_vm3, %v512_v42 }
 0x1c2   : > { %v608_v30 = vpop.f32.mrb[12].mxu1 }
 0x1c3   : > { %v609_v45 = vadd.f32 %v1616_v44, %v608_v30  ;;  %v1249_v46 = vpop.f32.mrb[13].mxu1 }
 0x1c4   : > { %v611_v47 = vpop.f32.mrb[14].mxu1 }
 0x1c5   : > { %v612_v48 = vadd.f32 %v1616_v44, %v611_v47  ;;  %v1250_v49 = vpop.f32.mrb[15].mxu1  ;;  %v662_v50 = vmax.f32 %v609_v45, 0.0 }
 0x1c7   : > { %v663_v51 = vmax.f32 %v612_v48, 0.0 }
 0x1c9   : > { %v675_v52 = vpack.c.bf16 %v663_v51, %v662_v50 }
 0x1ca   : > { %v616_v53 = vpop.f32.mrb[16].mxu1 }
 0x1cb   : > { %v617_v54 = vadd.f32 %v1616_v44, %v616_v53  ;;  %v1253_v55 = vpop.f32.mrb[17].mxu1  ;;  %1284 = vmatmul.mubr.msk.bf16.vlgmr.msra.gmra.mrb[16].mxu0 %vm552_vm3, %v675_v52 }
 0x1cc   : > { %v619_v56 = vpop.f32.mrb[18].mxu1  ;;  %1287 = vmatprep.mubr.msk.bf16.mxu0 %vm1393_vm1, %v1392_v1 }
 0x1cd   : > { %v620_v57 = vadd.f32 %v1616_v44, %v619_v56  ;;  %v1254_v58 = vpop.f32.mrb[19].mxu1  ;;  %v664_v59 = vmax.f32 %v617_v54, 0.0  ;;  %v1653_v56 = vld [vmem:[%s1859_s7] ss:$0 sm:$0xff] }
 0x1cf   : > { %v665_v60 = vmax.f32 %v620_v57, 0.0 }
 0x1d1   : > { %v676_v61 = vpack.c.bf16 %v665_v60, %v664_v59 }
 0x1d2   : > { %v624_v62 = vpop.f32.mrb[20].mxu1 }
 0x1d3   : > { %v625_v63 = vadd.f32 %v1616_v44, %v624_v62  ;;  %v1257_v0 = vpop.f32.mrb[21].mxu1  ;;  %1288 = vmatmul.mubr.msk.bf16.gmra.mrb[20].mxu0 %vm552_vm3, %v676_v61 }
 0x1d4   : > { %v627_v2 = vpop.f32.mrb[22].mxu1  ;;  %1291 = vmatprep.mubr.msk.bf16.mxu0 %vm1393_vm1, %v1392_v1 }
 0x1d5   : > { %v628_v5 = vadd.f32 %v1616_v44, %v627_v2  ;;  %v1258_v8 = vpop.f32.mrb[23].mxu1  ;;  %v666_v11 = vmax.f32 %v625_v63, 0.0 }
 0x1d7   : > { %v667_v12 = vmax.f32 %v628_v5, 0.0 }
 0x1d9   : > { %v677_v15 = vpack.c.bf16 %v667_v12, %v666_v11 }
 0x1da   : > { %v632_v16 = vpop.f32.mrb[24].mxu1 }
 0x1db   : > { %1292 = vmatmul.mubr.msk.bf16.gmra.mrb[24].mxu0 %vm552_vm3, %v677_v15  ;;  %v633_v17 = vadd.f32 %v1616_v44, %v632_v16  ;;  %v1261_v20 = vpop.f32.mrb[25].mxu1 }
 0x1dc   : > { %v635_v22 = vpop.f32.mrb[26].mxu1  ;;  %1295 = vmatprep.mubr.msk.bf16.mxu0 %vm1393_vm1, %v1392_v1 }
 0x1dd   : > { %v668_v25 = vmax.f32 %v633_v17, 0.0  ;;  %v636_v26 = vadd.f32 %v1616_v44, %v635_v22  ;;  %v1262_v27 = vpop.f32.mrb[27].mxu1 }
 0x1df   : > { %v669_v28 = vmax.f32 %v636_v26, 0.0 }
 0x1e1   : > { %v678_v29 = vpack.c.bf16 %v669_v28, %v668_v25 }
 0x1e2   : > { %v640_v31 = vpop.f32.mrb[28].mxu1 }
 0x1e3   : > { %1296 = vmatmul.mubr.msk.bf16.gmra.mrb[28].mxu0 %vm552_vm3, %v678_v29  ;;  %v641_v32 = vadd.f32 %v1616_v44, %v640_v31  ;;  %v1265_v33 = vpop.f32.mrb[29].mxu1  ;;  %v1675_v29 = vld [vmem:[%s1853_s1] ss:$0 sm:$0xff] }
 0x1e4   : > { %v643_v34 = vpop.f32.mrb[30].mxu1  ;;  %1299 = vmatprep.mubr.msk.bf16.mxu0 %vm1393_vm1, %v1392_v1 }
 0x1e5   : > { %v670_v35 = vmax.f32 %v641_v32, 0.0  ;;  %v644_v36 = vadd.f32 %v1616_v44, %v643_v34  ;;  %v1266_v37 = vpop.f32.mrb[31].mxu1 }
 0x1e7   : > { %v671_v38 = vmax.f32 %v644_v36, 0.0 }
 0x1e9   : > { %v679_v39 = vpack.c.bf16 %v671_v38, %v670_v35 }
 0x1ea   : > { %v648_v40 = vpop.f32.mrb[32].mxu1 }
 0x1eb   : > { %1300 = vmatmul.mubr.msk.bf16.gmra.mrb[32].mxu0 %vm552_vm3, %v679_v39  ;;  %v649_v41 = vadd.f32 %v1616_v44, %v648_v40  ;;  %v1269_v42 = vpop.f32.mrb[33].mxu1 }
 0x1ec   : > { %v651_v43 = vpop.f32.mrb[34].mxu1  ;;  %1303 = vmatprep.mubr.msk.bf16.mxu0 %vm1393_vm1, %v1392_v1 }
 0x1ed   : > { %v672_v30 = vmax.f32 %v649_v41, 0.0  ;;  %v652_v45 = vadd.f32 %v1616_v44, %v651_v43  ;;  %v1270_v46 = vpop.f32.mrb[35].mxu1 }
 0x1ef   : > { %v673_v47 = vmax.f32 %v652_v45, 0.0 }
 0x1f1   : > { %v680_v48 = vpack.c.bf16 %v673_v47, %v672_v30 }
 0x1f2   : > { %v656_v49 = vpop.f32.mrb[36].mxu1 }
 0x1f3   : > { %1304 = vmatmul.mubr.msk.bf16.gmra.mrb[36].mxu0 %vm552_vm3, %v680_v48  ;;  %v657_v50 = vadd.f32 %v1616_v44, %v656_v49  ;;  %v1273_v51 = vpop.f32.mrb[37].mxu1 }
 0x1f4   : > { %1307 = vmatprep.mubr.msk.bf16.mxu0 %vm1393_vm1, %v1392_v1  ;;  %v659_v52 = vpop.f32.mrb[38].mxu1 }
 0x1f5   : > { %v674_v53 = vmax.f32 %v657_v50, 0.0  ;;  %v1274_v54 = vpop.f32.mrb[39].mxu1 }
 0x1f7   : > { %v681_v55 = vpack.c.bf16 %v674_v53, %v674_v53 }
 0x1fb   : > { %1308 = vmatmul.mubr.msk.bf16.gmra.mrb[40].mxu0 %vm552_vm3, %v681_v55 }
 0x29e   : > { %v776_v57 = vpop.f32.mrb[16].mxu0 }
 0x29f   : > { %v777_v58 = vadd.f32 %v1653_v56, %v776_v57  ;;  %v1285_v59 = vpop.f32.mrb[17].mxu0 }
 0x2a0   : > { %v779_v44 = vpop.f32.mrb[18].mxu0 }
 0x2a1   : > { %v780_v60 = vadd.f32 %v1653_v56, %v779_v44  ;;  %889 = vrot.lane.b32.xlu1 %v777_v58, %s1394_s21  ;;  %v1286_v1 = vpop.f32.mrb[19].mxu0  ;;  %v830_v11 = vmax.f32 %v777_v58, 0.0 }
 0x2a3   : > { %891 = vrot.lane.b32.xlu0 %v780_v60, %s1394_s21  ;;  %v831_v17 = vmax.f32 %v780_v60, 0.0 }
 0x2a6   : > { %v784_v61 = vpop.f32.mrb[20].mxu0 }
 0x2a7   : > { %v785_v62 = vadd.f32 %v1653_v56, %v784_v61  ;;  %v1289_v63 = vpop.f32.mrb[21].mxu0 }
 0x2a8   : > { %v787_v0 = vpop.f32.mrb[22].mxu0 }
 0x2a9   : > { %v788_v2 = vadd.f32 %v1653_v56, %v787_v0  ;;  %893 = vrot.lane.b32.xlu1 %v785_v62, %s1394_s21  ;;  %v1290_v5 = vpop.f32.mrb[23].mxu0  ;;  %v832_v42 = vmax.f32 %v785_v62, 0.0 }
 0x2ab   : > { %v833_v8 = vmax.f32 %v788_v2, 0.0 }
 0x2ad   : > { %1332 = vtanh.f32 %v833_v8  ;;  %895 = vrot.lane.b32.xlu1 %v788_v2, %s1394_s21 }
 0x2ae   : > { %v792_v12 = vpop.f32.mrb[24].mxu0  ;;  %1334 = vtanh.f32 %v830_v11 }
 0x2af   : > { %v1664_v15 = vadd.f32 %v1653_v56, %v792_v12  ;;  %v1293_v16 = vpop.f32.mrb[25].mxu0  ;;  %1336 = vtanh.f32 %v831_v17 }
 0x2b0   : > { %v795_v20 = vpop.f32.mrb[26].mxu0 }
 0x2b1   : > { %v1667_v22 = vadd.f32 %v1653_v56, %v795_v20  ;;  %897 = vrot.lane.b32.xlu1 %v1664_v15, %s1394_s21  ;;  %v1294_v25 = vpop.f32.mrb[27].mxu0 }
 0x2b3   : > { %v835_v26 = vmax.f32 %v1667_v22, 0.0 }
 0x2b5   : > { %1338 = vtanh.f32 %v835_v26 }
 0x2b6   : > { %v800_v27 = vpop.f32.mrb[28].mxu0 }
 0x2b7   : > { %v1333_v28 = vpop.eup %1332  ;;  %v801_v31 = vadd.f32 %v1653_v56, %v800_v27  ;;  %v1297_v32 = vpop.f32.mrb[29].mxu0 }
 0x2b8   : > { %v803_v33 = vpop.f32.mrb[30].mxu0  ;;  %v1679_v34 = vmul.f32 %v1333_v28, %v1675_v29  ;;  %v1335_v38 = vpop.eup %1334 }
 0x2b9   : > { %v836_v35 = vmax.f32 %v801_v31, 0.0  ;;  %v804_v36 = vadd.f32 %v1653_v56, %v803_v33  ;;  %v1298_v37 = vpop.f32.mrb[31].mxu0  ;;  %v863_v40 = vmul.f32 %v1335_v38, %v1675_v29  ;;  %v1337_v41 = vpop.eup %1336 }
 0x2ba   : > { %v864_v50 = vmul.f32 %v1337_v41, %v1675_v29 }
 0x2bb   : > { %1340 = vtanh.f32 %v836_v35  ;;  %v837_v39 = vmax.f32 %v804_v36, 0.0  ;;  %v993_v49 = vsel %vm379_vm2, %v863_v40, 0.0  ;;  %v941_v41 = vmul.f32 1.442695, %v863_v40 }
 0x2bc   : > { %v996_v55 = vsel %vm379_vm2, %v864_v50, 0.0 }
 0x2bd   : > { %1342 = vtanh.f32 %v837_v39 }
 0x2be   : > { %v808_v43 = vpop.f32.mrb[32].mxu0  ;;  %1344 = vtanh.f32 %v832_v42  ;;  %v943_v42 = vmul.f32 1.442695, %v864_v50 }
 0x2bf   : > { %v1339_v30 = vpop.eup %1338  ;;  %v1684_v45 = vadd.f32 %v1653_v56, %v808_v43  ;;  %v1301_v46 = vpop.f32.mrb[33].mxu0  ;;  %v1002_v43 = vsel %vm379_vm2, %v1679_v34, 0.0 }
 0x2c0   : > { %v811_v47 = vpop.f32.mrb[34].mxu0  ;;  %v1687_v48 = vmul.f32 %v1339_v30, %v1675_v29 }
 0x2c1   : > { %v838_v51 = vmax.f32 %v1684_v45, 0.0  ;;  %v1693_v52 = vadd.f32 %v1653_v56, %v811_v47  ;;  %v1302_v53 = vpop.f32.mrb[35].mxu0 }
 0x2c2   : > { %994 = vadd.xlane.f32.xlu0 %v993_v49 }
 0x2c3   : > { %1346 = vtanh.f32 %v838_v51 }
 0x2c5   : > { %v1341_v54 = vpop.eup %1340 }
 0x2c6   : > { %997 = vadd.xlane.f32.xlu0 %v996_v55  ;;  %v816_v57 = vpop.f32.mrb[36].mxu0  ;;  %v1697_v58 = vmul.f32 %v1341_v54, %v1675_v29 }
 0x2c7   : > { %v1343_v59 = vpop.eup %1342  ;;  %v1700_v44 = vadd.f32 %v1653_v56, %v816_v57  ;;  %v1305_v60 = vpop.f32.mrb[37].mxu0 }
 0x2c8   : > { %v1703_v1 = vmul.f32 %v1343_v59, %v1675_v29  ;;  %v819_v61 = vpop.f32.mrb[38].mxu0  ;;  %v1345_v5 = vpop.eup %1344 }
 0x2c9   : > { %v840_v62 = vmax.f32 %v1700_v44, 0.0  ;;  %v1707_v63 = vadd.f32 %v1653_v56, %v819_v61  ;;  %v1306_v0 = vpop.f32.mrb[39].mxu0  ;;  %v865_v20 = vmul.f32 %v1345_v5, %v1675_v29 }
 0x2cb   : > { %1348 = vtanh.f32 %v840_v62  ;;  %v841_v2 = vmax.f32 %v1707_v63, 0.0  ;;  %v999_v27 = vsel %vm379_vm2, %v865_v20, 0.0 }
 0x2cd   : > { %v1347_v8 = vpop.eup %1346  ;;  %1350 = vtanh.f32 %v841_v2 }
 0x2ce   : > { %v824_v11 = vpop.f32.mrb[40].mxu0  ;;  %v1711_v12 = vmul.f32 %v1347_v8, %v1675_v29 }
 0x2cf   : > { %v1714_v16 = vadd.f32 %v1653_v56, %v824_v11  ;;  %v1309_v17 = vpop.f32.mrb[41].mxu0  ;;  %v834_v56 = vmax.f32 %v1664_v15, 0.0  ;;  %v947_v15 = vmul.f32 1.442695, %v1679_v34  ;;  %v1008_v11 = vsel %vm379_vm2, %v1687_v48, 0.0 }
 0x2d0   : > { %v827_v25 = vpop.f32.mrb[42].mxu0  ;;  %v1017_v2 = vsel %vm379_vm2, %v1711_v12, 0.0  ;;  %v951_v17 = vmul.f32 1.442695, %v1687_v48 }
 0x2d1   : > { %v1310_v26 = vpop.f32.mrb[43].mxu0  ;;  %1352 = vtanh.f32 %v834_v56  ;;  %v955_v25 = vmul.f32 1.442695, %v1703_v1 }
 0x2d2   : > { %1354 = vpow2.f32 %v941_v41 }
 0x2d3   : > { %1356 = vpow2.f32 %v943_v42 }
 0x2d5   : > { %v1349_v28 = vpop.eup %1348  ;;  %1000 = vadd.xlane.f32.xlu1 %v999_v27 }
 0x2d6   : > { %v1719_v32 = vmul.f32 %v1349_v28, %v1675_v29 }
 0x2d7   : > { %v1351_v33 = vpop.eup %1350 }
 0x2d8   : > { %v1722_v35 = vmul.f32 %v1351_v33, %v1675_v29  ;;  %v953_v33 = vmul.f32 1.442695, %v1697_v58 }
 0x2db   : > { %v1353_v37 = vpop.eup %1352 }
 0x2dc   : > { %899 = vrot.lane.b32.xlu0 %v1667_v22, %s1394_s21  ;;  %v867_v38 = vmul.f32 %v1353_v37, %v1675_v29  ;;  %v945_v22 = vmul.f32 1.442695, %v865_v20  ;;  %v1355_v30 = vpop.eup %1354 }
 0x2dd   : > { %v1357_v34 = vpop.eup %1356 }
 0x2de   : > { %v1005_v39 = vsel %vm379_vm2, %v867_v38, 0.0  ;;  %1358 = vpow2.f32 %v945_v22  ;;  %v949_v49 = vmul.f32 1.442695, %v867_v38  ;;  %v1014_v22 = vsel %vm379_vm2, %v1703_v1, 0.0 }
 0x2df   : > { %1360 = vpow2.f32 %v947_v15 }
 0x2e0   : > { %903 = vrot.lane.b32.xlu0 %v804_v36, %s1394_s21  ;;  %1362 = vpow2.f32 %v949_v49 }
 0x2e6   : > { %901 = vrot.lane.b32.xlu1 %v801_v31, %s1394_s21 }
 0x2e8   : > { %v1359_v53 = vpop.eup %1358 }
 0x2e9   : > { %v1361_v57 = vpop.eup %1360 }
 0x2ea   : > { %v1363_v62 = vpop.eup %1362 }
 0x2ff   : > { %1006 = vadd.xlane.f32.xlu0 %v1005_v39 }
 0x30a   : > { %1003 = vadd.xlane.f32.xlu1 %v1002_v43 }
 0x313   : > { %v890_v31 = vpop.permute.xlu1 %889 }
 0x314   : > { %v928_v36 = vadd.f32 %v890_v31, %v1473_v3  ;;  %v1026_v31 = vsel %vm379_vm2, %v1722_v35, 0.0 }
 0x315   : > { %v892_v40 = vpop.permute.xlu0 %891  ;;  %907 = vrot.lane.b32.xlu0 %v1693_v52, %s1394_s21 }
 0x316   : > { %v967_v46 = vmul.f32 %v1355_v30, %v928_v36  ;;  %v929_v47 = vadd.f32 %v892_v40, %v1476_v4 }
 0x318   : > { %980 = vst.msk [vmem:[%s1739_s26] sm:$0xff] %vm379_vm2, %v967_v46  ;;  %v968_v3 = vmul.f32 %v1357_v34, %v929_v47 }
 0x31a   : > { %981 = vst.msk [vmem:[%s1739_s26 + $0x8] sm:$0xff] %vm379_vm2, %v968_v3  ;;  %v961_v3 = vmul.f32 1.442695, %v1719_v32 }
 0x31b   : > { %v894_v50 = vpop.permute.xlu1 %893  ;;  %905 = vrot.lane.b32.xlu1 %v1684_v45, %s1394_s21  ;;  %v1011_v45 = vsel %vm379_vm2, %v1697_v58, 0.0 }
 0x31c   : > { %v930_v51 = vadd.f32 %v894_v50, %v1493_v9  ;;  %v842_v9 = vmax.f32 %v1714_v16, 0.0  ;;  %v963_v50 = vmul.f32 1.442695, %v1722_v35 }
 0x31e   : > { %v969_v54 = vmul.f32 %v1359_v53, %v930_v51  ;;  %1364 = vtanh.f32 %v842_v9 }
 0x31f   : > { %v896_v4 = vpop.permute.xlu1 %895  ;;  %1366 = vpow2.f32 %v951_v17 }
 0x320   : > { %982 = vst.msk [vmem:[%s1739_s26 + $0x10] sm:$0xff] %vm379_vm2, %v969_v54  ;;  %v931_v55 = vadd.f32 %v896_v4, %v1496_v10  ;;  %1368 = vpow2.f32 %v955_v25 }
 0x321   : > { %1370 = vpow2.f32 %v953_v33 }
 0x322   : > { %v970_v59 = vmul.f32 %v1361_v57, %v931_v55 }
 0x323   : > { %v898_v60 = vpop.permute.xlu1 %897 }
 0x324   : > { %983 = vst.msk [vmem:[%s1739_s26 + $0x18] sm:$0xff] %vm379_vm2, %v970_v59  ;;  %v932_v61 = vadd.f32 %v898_v60, %v1524_v18  ;;  %v1023_v18 = vsel %vm379_vm2, %v1719_v32, 0.0 }
 0x326   : > { %v971_v0 = vmul.f32 %v1363_v62, %v932_v61 }
 0x328   : > { %984 = vst.msk [vmem:[%s1739_s26 + $0x20] sm:$0xff] %vm379_vm2, %v971_v0  ;;  %v1365_v10 = vpop.eup %1364 }
 0x329   : > { %v1767_v5 = vmul.f32 %v1365_v10, %v1675_v29  ;;  %v1367_v28 = vpop.eup %1366 }
 0x32a   : > { %v1369_v38 = vpop.eup %1368 }
 0x32b   : > { %v1029_v8 = vsel %vm379_vm2, %v1767_v5, 0.0  ;;  %v1371_v42 = vpop.eup %1370  ;;  %v965_v62 = vmul.f32 1.442695, %v1767_v5 }
 0x334   : > { %1012 = vadd.xlane.f32.xlu0 %v1011_v45 }
 0x338   : > { %1018 = vadd.xlane.f32.xlu0 %v1017_v2 }
 0x33c   : > { %1024 = vadd.xlane.f32.xlu0 %v1023_v18 }
 0x33f   : > { %1009 = vadd.xlane.f32.xlu1 %v1008_v11 }
 0x340   : > { %1030 = vadd.xlane.f32.xlu0 %v1029_v8 }
 0x34f   : > { %v995_v20 = vpop.xlane.xlu0 %994 }
 0x350   : > { %1033 = vst.msk [vmem:[%s1778_s29] sm:$0xff] %vm1032_vm4, %v995_v20  ;;  %909 = vrot.lane.b32.xlu1 %v1700_v44, %s1394_s21 }
 0x353   : > { %v998_v48 = vpop.xlane.xlu0 %997 }
 0x354   : > { %1034 = vst.msk [vmem:[%s1778_s29 + $0x8] sm:$0xff] %vm1032_vm4, %v998_v48 }
 0x356   : > { %911 = vrot.lane.b32.xlu0 %v1707_v63, %s1394_s21  ;;  %v839_v63 = vmax.f32 %v1693_v52, 0.0 }
 0x357   : > { %v900_v26 = vpop.permute.xlu0 %899 }
 0x358   : > { %v933_v27 = vadd.f32 %v900_v26, %v1527_v19  ;;  %1372 = vtanh.f32 %v839_v63 }
 0x35a   : > { %v972_v56 = vmul.f32 %v1367_v28, %v933_v27 }
 0x35b   : > { %v904_v37 = vpop.permute.xlu0 %903 }
 0x35c   : > { %985 = vst.msk [vmem:[%s1739_s26 + $0x28] sm:$0xff] %vm379_vm2, %v972_v56  ;;  %v935_v44 = vadd.f32 %v904_v37, %v1548_v24 }
 0x35e   : > { %v974_v39 = vmul.f32 %v1369_v38, %v935_v44 }
 0x360   : > { %987 = vst.msk [vmem:[%s1739_s26 + $0x38] sm:$0xff] %vm379_vm2, %v974_v39 }
 0x362   : > { %v1001_v41 = vpop.xlane.xlu1 %1000  ;;  %v1373_v24 = vpop.eup %1372 }
 0x363   : > { %1035 = vst.msk [vmem:[%s1778_s29 + $0x10] sm:$0xff] %vm1032_vm4, %v1001_v41  ;;  %v872_v15 = vmul.f32 %v1373_v24, %v1675_v29  ;;  %v957_v29 = vmul.f32 1.442695, %v1711_v12 }
 0x365   : > { %v1020_v52 = vsel %vm379_vm2, %v872_v15, 0.0 }
 0x366   : > { %v902_v19 = vpop.permute.xlu1 %901 }
 0x367   : > { %v934_v58 = vadd.f32 %v902_v19, %v1545_v23  ;;  %v959_v23 = vmul.f32 1.442695, %v872_v15 }
 0x369   : > { %v973_v43 = vmul.f32 %v1371_v42, %v934_v58  ;;  %1374 = vpow2.f32 %v959_v23 }
 0x36a   : > { %1376 = vpow2.f32 %v957_v29 }
 0x36b   : > { %986 = vst.msk [vmem:[%s1739_s26 + $0x30] sm:$0xff] %vm379_vm2, %v973_v43  ;;  %1378 = vpow2.f32 %v961_v3 }
 0x36c   : > { %1380 = vpow2.f32 %v963_v50 }
 0x36d   : > { %1382 = vpow2.f32 %v965_v62 }
 0x373   : > { %v1375_v40 = vpop.eup %1374 }
 0x374   : > { %1015 = vadd.xlane.f32.xlu1 %v1014_v22  ;;  %v1377_v49 = vpop.eup %1376 }
 0x375   : > { %v1379_v55 = vpop.eup %1378 }
 0x376   : > { %v1381_v59 = vpop.eup %1380 }
 0x377   : > { %v1383_v10 = vpop.eup %1382 }
 0x378   : > { %1021 = vadd.xlane.f32.xlu1 %v1020_v52 }
 0x37c   : > { %1027 = vadd.xlane.f32.xlu1 %v1026_v31 }
 0x38c   : > { %v1007_v36 = vpop.xlane.xlu0 %1006 }
 0x38d   : > { %1037 = vst.msk [vmem:[%s1778_s29 + $0x20] sm:$0xff] %vm1032_vm4, %v1007_v36  ;;  %913 = vrot.lane.b32.xlu1 %v1714_v16, %s1394_s21 }
 0x390   : > { %v908_v1 = vpop.permute.xlu0 %907 }
 0x391   : > { %v937_v30 = vadd.f32 %v908_v1, %v1485_v7 }
 0x393   : > { %v976_v46 = vmul.f32 %v1375_v40, %v937_v30 }
 0x395   : > { %989 = vst.msk [vmem:[%s1739_s26 + $0x48] sm:$0xff] %vm379_vm2, %v976_v46 }
 0x397   : > { %v1004_v47 = vpop.xlane.xlu1 %1003 }
 0x398   : > { %1036 = vst.msk [vmem:[%s1778_s29 + $0x18] sm:$0xff] %vm1032_vm4, %v1004_v47 }
 0x39b   : > { %v906_v34 = vpop.permute.xlu1 %905 }
 0x39c   : > { %v936_v16 = vadd.f32 %v906_v34, %v1481_v6 }
 0x39e   : > { %v975_v12 = vmul.f32 %v1377_v49, %v936_v16 }
 0x3a0   : > { %988 = vst.msk [vmem:[%s1739_s26 + $0x40] sm:$0xff] %vm379_vm2, %v975_v12 }
 0x3c1   : > { %v1013_v7 = vpop.xlane.xlu0 %1012 }
 0x3c2   : > { %1039 = vst.msk [vmem:[%s1778_s29 + $0x30] sm:$0xff] %vm1032_vm4, %v1013_v7 }
 0x3c5   : > { %v1019_v51 = vpop.xlane.xlu0 %1018 }
 0x3c6   : > { %1041 = vst.msk [vmem:[%s1778_s29 + $0x40] sm:$0xff] %vm1032_vm4, %v1019_v51 }
 0x3c9   : > { %v1025_v6 = vpop.xlane.xlu0 %1024 }
 0x3ca   : > { %1043 = vst.msk [vmem:[%s1778_s29 + $0x50] sm:$0xff] %vm1032_vm4, %v1025_v6 }
 0x3cc   : > { %v1010_v53 = vpop.xlane.xlu1 %1009 }
 0x3cd   : > { %1038 = vst.msk [vmem:[%s1778_s29 + $0x28] sm:$0xff] %vm1032_vm4, %v1010_v53  ;;  %v1031_v54 = vpop.xlane.xlu0 %1030 }
 0x3ce   : > { %1045 = vst.msk [vmem:[%s1778_s29 + $0x60] sm:$0xff] %vm1032_vm4, %v1031_v54 }
 0x3d0   : > { %v910_v32 = vpop.permute.xlu1 %909 }
 0x3d1   : > { %v938_v35 = vadd.f32 %v910_v32, %v1506_v13  ;;  %v912_v4 = vpop.permute.xlu0 %911 }
 0x3d2   : > { %v939_v57 = vadd.f32 %v912_v4, %v1509_v14 }
 0x3d3   : > { %v977_v60 = vmul.f32 %v1379_v55, %v938_v35 }
 0x3d4   : > { %v978_v61 = vmul.f32 %v1381_v59, %v939_v57 }
 0x3d5   : > { %990 = vst.msk [vmem:[%s1739_s26 + $0x50] sm:$0xff] %vm379_vm2, %v977_v60 }
 0x3d6   : > { %991 = vst.msk [vmem:[%s1739_s26 + $0x58] sm:$0xff] %vm379_vm2, %v978_v61 }
 0x401   : > { %v1016_v0 = vpop.xlane.xlu1 %1015 }
 0x402   : > { %1040 = vst.msk [vmem:[%s1778_s29 + $0x38] sm:$0xff] %vm1032_vm4, %v1016_v0 }
 0x405   : > { %v1022_v13 = vpop.xlane.xlu1 %1021 }
 0x406   : > { %1042 = vst.msk [vmem:[%s1778_s29 + $0x48] sm:$0xff] %vm1032_vm4, %v1022_v13 }
 0x409   : > { %v1028_v9 = vpop.xlane.xlu1 %1027 }
 0x40a   : > { %1044 = vst.msk [vmem:[%s1778_s29 + $0x58] sm:$0xff] %vm1032_vm4, %v1028_v9 }
 0x40d   : > { %v914_v14 = vpop.permute.xlu1 %913 }
 0x40e   : > { %v940_v45 = vadd.f32 %v914_v14, %v1536_v21 }
 0x410   : > { %v979_v2 = vmul.f32 %v1383_v10, %v940_v45 }
 0x412   : > { %992 = vst.msk [vmem:[%s1739_s26 + $0x60] sm:$0xff] %vm379_vm2, %v979_v2 }
 0x413 PF: > { %s20_s30 = sadd.s32 1, %s1390_s30  }
 0x414   : > { %p17_p4 = scmp.ge.s32.totalorder %s20_s30, 4  }
 0x416   :  { %19 = sbr.rel (!%p17_p4) target bundleno = 1 (0x1), region = 94 }

</bundles_post_ra>
